<compile_context>
chip_gen: v7x
topology: tpu7x:2x2x1
jax: 0.10.0
libtpu: 0.0.40
codegen_flags: <defaults>
</compile_context>

<pallas_src>
import jax
import jax.numpy as jnp
from jax.experimental import pallas as pl
from jax.experimental.pallas import tpu as pltpu


def _round_up(a: int, b: int) -> int:
    return (a + b - 1) // b * b


def _cdiv(a: int, b: int) -> int:
    return (a + b - 1) // b


def _generation_defaults():
    """Per-TPU-generation tile caps and VMEM limit (double-buffered x tiles)."""
    kind = ""
    try:
        kind = jax.devices()[0].device_kind.lower()
    except Exception:
        pass
    if "v7" in kind:
        # 64 MiB/TC physical VMEM: 2 x 16 MiB double-buffered x tiles + headroom.
        # Also want >= 2 parallel V-tiles so both TensorCores stream.
        return dict(max_tv=1024, max_tn=4096, vmem_limit=48 * 1024 * 1024, min_v_tiles=2)
    if "v6" in kind:
        # 128 MiB VMEM: big tiles to amortize the ~0.35us/step grid overhead.
        return dict(max_tv=1024, max_tn=4096, vmem_limit=64 * 1024 * 1024, min_v_tiles=1)
    if "v5" in kind and ("lite" in kind or "v5e" in kind):
        # v5e scoped default is only 16 MiB -> explicit limit; 8 MiB tiles.
        return dict(max_tv=512, max_tn=4096, vmem_limit=48 * 1024 * 1024, min_v_tiles=1)
    # Conservative fallback (v4 / v5p / unknown).
    return dict(max_tv=512, max_tn=2048, vmem_limit=32 * 1024 * 1024, min_v_tiles=1)


# ---------------------------------------------------------------------------
# Kernel 1: numerically-stable log-softmax over a lane-major (1, V) vector.
# ---------------------------------------------------------------------------
def _log_softmax_kernel(s_ref, logp_ref):
    s = s_ref[...].astype(jnp.float32)                           # (1, V)
    m = jnp.max(s, axis=-1, keepdims=True)                       # (1, 1) lane reduce
    z = s - m                                                    # (1, V)
    lse = jnp.log(jnp.sum(jnp.exp(z), axis=-1, keepdims=True))   # (1, 1)
    logp_ref[...] = z - lse                                      # (1, V)


# ---------------------------------------------------------------------------
# Kernel 2: streaming weighted reduction over x tiles.
#   For each V-tile:  part[vi] = sum_v ( sum_n x[v, n] ) * logp[v]
#   N axis is the (resident-accumulator) reduction axis.
# ---------------------------------------------------------------------------
def _make_weighted_sum_kernel(V, N, tv, tn):
    row_tail = (V % tv) != 0
    col_tail = (N % tn) != 0

    def kernel(x_ref, logp_ref, part_ref, acc_ref):
        vi = pl.program_id(0)
        ni = pl.program_id(1)

        @pl.when(ni == 0)
        def _():
            acc_ref[...] = jnp.zeros_like(acc_ref)

        xt = x_ref[...].astype(jnp.float32)                      # (tv, tn), cast after DMA

        # In-kernel tail masking (replaces jnp.pad of x: no extra HBM traffic).
        # Only emitted when the shape is actually unaligned; VPU ops hide under
        # the tile DMA.  Masked region may contain garbage/NaN -> must be zeroed.
        mask = None
        if col_tail:
            col_ids = jax.lax.broadcasted_iota(jnp.int32, (tv, tn), 1)
            mask = col_ids < (N - ni * tn)
        if row_tail:
            row_ids = jax.lax.broadcasted_iota(jnp.int32, (tv, tn), 0)
            rmask = row_ids < (V - vi * tv)
            mask = rmask if mask is None else jnp.logical_and(mask, rmask)
        if mask is not None:
            xt = jnp.where(mask, xt, 0.0)

        # Steady state: lane-axis row sums accumulated into an f32 VMEM scratch.
        acc_ref[...] += jnp.sum(xt, axis=1, keepdims=True)       # (tv, 1)

        # Finalize once per V-tile: contract with logp, write 128 equal lanes.
        @pl.when(ni == pl.num_programs(1) - 1)
        def _():
            tot = jnp.sum(acc_ref[...] * logp_ref[...])          # scalar
            part_ref[...] = jnp.zeros_like(part_ref) + tot       # (1, 128) broadcast

    return kernel


def unigram_forward(x, s, *, max_tv=None, max_tn=None, vmem_limit_bytes=None):
    """x: (V, N), s: (V, 1)  ->  (1, 1) float32 (same semantics as Unigram.forward)."""
    V, N = x.shape
    assert s.shape == (V, 1)

    cfg = _generation_defaults()
    max_tv = cfg["max_tv"] if max_tv is None else max_tv
    max_tn = cfg["max_tn"] if max_tn is None else max_tn
    vmem_limit_bytes = cfg["vmem_limit"] if vmem_limit_bytes is None else vmem_limit_bytes
    min_v_tiles = cfg["min_v_tiles"]

    # ---- logp = log_softmax(s, axis=0), computed lane-major on (1, V) ----
    s_row = s.reshape(1, V).astype(jnp.float32)
    logp_row = pl.pallas_call(
        _log_softmax_kernel,
        out_shape=jax.ShapeDtypeStruct((1, V), jnp.float32),
        cost_estimate=pl.CostEstimate(
            flops=5 * V, transcendentals=2 * V, bytes_accessed=8 * V),
    )(s_row)

    # ---- tile sizes: sublane/lane aligned, per-generation caps ----
    tv = min(max_tv, _round_up(V, 8))
    if min_v_tiles > 1 and V > 8 * min_v_tiles:
        # v7x: guarantee >= 2 tiles along the "parallel" V axis (2 TCs/chip).
        tv = min(tv, _round_up(_cdiv(V, min_v_tiles), 8))
    tn = min(max_tn, _round_up(N, 128))
    nv, nn = _cdiv(V, tv), _cdiv(N, tn)

    # Only the O(V) logp is zero-padded; x streams unpadded (tails masked in-kernel).
    logp_col = logp_row.reshape(V, 1)
    if nv * tv != V:
        logp_col = jnp.pad(logp_col, ((0, nv * tv - V), (0, 0)))

    x_bytes = x.size * x.dtype.itemsize
    partials = pl.pallas_call(
        _make_weighted_sum_kernel(V, N, tv, tn),
        out_shape=jax.ShapeDtypeStruct((1, nv * 128), jnp.float32),
        grid=(nv, nn),
        in_specs=[
            pl.BlockSpec((tv, tn), lambda vi, ni: (vi, ni)),   # streamed x tile
            pl.BlockSpec((tv, 1), lambda vi, ni: (vi, 0)),     # matching logp slice
        ],
        out_specs=pl.BlockSpec((1, 128), lambda vi, ni: (0, vi)),  # per-V-tile partial
        scratch_shapes=[pltpu.VMEM((tv, 1), jnp.float32)],         # resident accumulator
        compiler_params=pltpu.CompilerParams(
            dimension_semantics=("parallel", "arbitrary"),
            vmem_limit_bytes=vmem_limit_bytes,
        ),
        cost_estimate=pl.CostEstimate(
            flops=2 * V * N + 3 * V,
            transcendentals=0,
            bytes_accessed=x_bytes + nv * tv * 4 + nv * 128 * 4,
        ),
        # TODO(synk): on v7x, sweep pipeline_mode=pl.Buffered(3) on the x spec
        # (short per-tile DMA exposes issue latency); kept at default 2 here.
    )(x, logp_col)

    # Tiny final reduce over the per-V-tile partials (lanes are all equal).
    out = jnp.sum(partials.reshape(nv, 128)[:, 0]).reshape(1, 1)
    return out


def _reference(x, s):
    logp = jax.nn.log_softmax(s.astype(jnp.float32), axis=0)
    return jnp.sum(x.astype(jnp.float32), axis=1, keepdims=True).T @ logp


if __name__ == "__main__":
    keys = jax.random.split(jax.random.PRNGKey(0), 6)

    # --- Case 1: aligned shapes, small tile overrides so the
    #     (parallel V-tiles x arbitrary N-tiles) grid is exercised. ---
    V, N = 256, 512
    s = 1.0 + 0.1 * jax.random.normal(keys[0], (V, 1), dtype=jnp.float32)
    x = jax.random.uniform(keys[1], (V, N), dtype=jnp.float32)
    out = jax.block_until_ready(unigram_forward(x, s, max_tv=128, max_tn=256))
    ref = _reference(x, s)
    assert out.shape == (1, 1)
    assert jnp.allclose(out, ref, rtol=1e-4, atol=1e-4), (out, ref)

    # --- Case 2: unaligned shapes exercise the in-kernel tail-masking path
    #     (no padded HBM copy of x) with auto per-generation tile defaults. ---
    V2, N2 = 100, 200
    s2 = 1.0 + 0.1 * jax.random.normal(keys[2], (V2, 1), dtype=jnp.float32)
    x2 = jax.random.uniform(keys[3], (V2, N2), dtype=jnp.float32)
    out2 = jax.block_until_ready(unigram_forward(x2, s2))
    ref2 = _reference(x2, s2)
    assert out2.shape == (1, 1)
    assert jnp.allclose(out2, ref2, rtol=1e-4, atol=1e-4), (out2, ref2)

    # --- Case 3: bf16 input streams at half the HBM bytes; upcast to f32 only
    #     inside the kernel, accumulation stays f32. ---
    V3, N3 = 72, 160
    s3 = 1.0 + 0.1 * jax.random.normal(keys[4], (V3, 1), dtype=jnp.float32)
    x3 = jax.random.uniform(keys[5], (V3, N3), dtype=jnp.float32).astype(jnp.bfloat16)
    out3 = jax.block_until_ready(unigram_forward(x3, s3))
    ref3 = _reference(x3, s3)
    assert out3.shape == (1, 1)
    assert jnp.allclose(out3, ref3, rtol=1e-3, atol=1e-2), (out3, ref3)

    print("KERNEL_OK")
</pallas_src>

<mosaic_0001>
module attributes {stable_mosaic.version = 11 : i64} {
  func.func @_log_softmax_kernel(%arg0: memref<1x256xf32, #tpu.memory_space<vmem>>, %arg1: memref<1x256xf32, #tpu.memory_space<vmem>>) attributes {dimension_semantics = [], scalar_prefetch = 0 : i64, scratch_operands = 0 : i64, tpu.core_type = #tpu.core_type<tc>} {
    %c0 = arith.constant 0 : index
    %c0_0 = arith.constant 0 : index
    %0 = vector.load %arg0[%c0, %c0_0] : memref<1x256xf32, #tpu.memory_space<vmem>>, vector<1x256xf32>
    %cst = arith.constant dense<0xFF800000> : vector<1xf32>
    %1 = vector.multi_reduction <maximumf>, %0, %cst [1] : vector<1x256xf32> to vector<1xf32>
    %2 = vector.shape_cast %1 : vector<1xf32> to vector<1x1xf32>
    %3 = vector.broadcast %2 : vector<1x1xf32> to vector<1x256xf32>
    %4 = arith.subf %0, %3 : vector<1x256xf32>
    %5 = math.exp %4 : vector<1x256xf32>
    %cst_1 = arith.constant dense<0.000000e+00> : vector<1xf32>
    %6 = vector.multi_reduction <add>, %5, %cst_1 [1] : vector<1x256xf32> to vector<1xf32>
    %7 = vector.shape_cast %6 : vector<1xf32> to vector<1x1xf32>
    %8 = math.log %7 : vector<1x1xf32>
    %9 = vector.broadcast %8 : vector<1x1xf32> to vector<1x256xf32>
    %10 = arith.subf %4, %9 : vector<1x256xf32>
    %c0_2 = arith.constant 0 : index
    %c0_3 = arith.constant 0 : index
    %11 = vector.load %arg1[%c0_2, %c0_3] : memref<1x256xf32, #tpu.memory_space<vmem>>, vector<1x256xf32>
    tpu.vector_store %arg1[%c0_2, %c0_3], %10 {strides = array<i32>} : memref<1x256xf32, #tpu.memory_space<vmem>>, vector<1x256xf32>,
    return
  }
}

</mosaic_0001>

<bundles_post_ra>
// kernel: tpu_custom_call.1
= control target key start
LH: loop header
LB: loop body
LE: loop exit
PB: predicated region body
PF: predicated region fallthrough
CT: control target
= control target key end

     0   :  { %6 = vsyncpa [#allocation3], 0  ;;  %s187_s0 = inlined_call_operand.hbm [shape: f32[1,256], index: 0, kind: input, shape index: {}]   ;;  %s188_s1 = inlined_call_operand.hbm [shape: f32[1,256], index: 1, kind: output, shape index: {}]  }
   0x1   :  { %7 = vsyncpa [#allocation4], 0  ;;  %s147_s6 = smov [#allocation2]   ;;  %s99_s10 = scalar_lea.hbm %s187_s0, 32 }
   0x2   :  { %s14_s7 = sshll.u32 %s147_s6, 4  ;;  %p100_p0 = scmp.ne.s32.totalorder %s187_s0, %s99_s10  ;;  %s15_s7 = int_to_ptr.vmem [resolvable:$true] %s14_s7 }
   0x3   :  { %p103_p1 = scmp.lt.u32.totalorder %s99_s10, %s187_s0 }
   0x5   :  { %p105_p2 = pnand %p103_p1, %p100_p0 }
   0x7   :  { %108 = shalt.err (!%p105_p2)
}
   0x8   :  { %s109_s15 = scalar_lea.vmem %s15_s7, 32  ;;  %p114_p4 = scmp.lt.s32.totalorder %s15_s7, %s15_s7 }
   0x9   :  { %p110_p3 = scmp.ne.s32.totalorder %s15_s7, %s109_s15  ;;  %p115_p5 = scmp.lt.s32.totalorder %s109_s15, %s109_s15 }
   0xb   :  { %p116_p6 = por %p115_p5, %p114_p4 }
   0xd   :  { %p117_p7 = pnand %p116_p6, %p110_p3 }
   0xf   :  { %120 = shalt.err (!%p117_p7)
}
  0x10   :  { %17 = dma.hbm_to_vmem [thread:$0]  %s187_s0, 32, %s15_s7, [#allocation3]  }
  0x11   :  { %143 = dma.done.wait [#allocation3], 32  }
  0x12   :  { %144 = vsyncadd [#allocation3], 4294967264  ;;  %v23_v0 = vlaneseq  ;;  %v21_v4 = vld [vmem:[#allocation2] sm:$0x3]  ;;  %vm33_vm0 = vcmask 1040384   ;;  %s148_s0 = smov [#allocation5]  }
  0x13   :  { %s84_s18 = sshll.u32 %s148_s0, 4  ;;  %s85_s18 = int_to_ptr.vmem [resolvable:$true] %s84_s18 }
  0x14   :  { %v24_v1 = vshrl.u32 %v23_v0, 7  ;;  %vm75_vm1 = vcmp.lt.s32.totalorder %v23_v0, 256  ;;  %s121_s19 = scalar_lea.vmem %s85_s18, 32  ;;  %p126_p9 = scmp.lt.s32.totalorder %s85_s18, %s85_s18 }
  0x15   :  { %p122_p8 = scmp.ne.s32.totalorder %s85_s18, %s121_s19  ;;  %p127_p10 = scmp.lt.s32.totalorder %s121_s19, %s121_s19 }
  0x16   :  { %v25_v2 = vsub.s32 0, %v24_v1  ;;  %v29_v3 = vsub.s32 1, %v24_v1 }
  0x17   :  { %p128_p11 = por %p127_p10, %p126_p9 }
  0x18   :  { %v26_v5 = vrot.slane %v21_v4, %v25_v2  ;;  %v30_v6 = vrot.slane %v21_v4, %v29_v3 }
  0x19   :  { %p129_p12 = pnand %p128_p11, %p122_p8 }
  0x1a   :  { %v34_v7 = vsel %vm33_vm0, %v26_v5, -inf  ;;  %v35_v8 = vsel %vm33_vm0, %v30_v6, -inf }
  0x1b   :  { %v36_v9 = vmax.f32 %v34_v7, %v35_v8 }
  0x1d   :  { %37 = vmax.xlane.f32.xlu0 %v36_v9 }
  0xaa   :  { %v38_v10 = vpop.xlane.xlu0 %37 }
  0xab   :  { %v43_v11 = vrot.slane %v38_v10, %v25_v2 }
  0xad   :  { %v45_v12 = vsub.f32 %v21_v4, %v43_v11 }
  0xaf   :  { %v46_v13 = vmul.f32 1.442695, %v45_v12 }
  0xb1   :  { %95 = vpow2.f32 %v46_v13 }
  0xbb   :  { %v96_v14 = vpop.eup %95 }
  0xbc   :  { %v52_v15 = vrot.slane %v96_v14, %v25_v2  ;;  %v56_v16 = vrot.slane %v96_v14, %v29_v3 }
  0xbe   :  { %v59_v17 = vsel %vm33_vm0, %v52_v15, 0.0  ;;  %v60_v18 = vsel %vm33_vm0, %v56_v16, 0.0 }
  0xbf   :  { %v61_v19 = vadd.f32 %v60_v18, %v59_v17 }
  0xc1   :  { %62 = vadd.xlane.f32.xlu0 %v61_v19 }
 0x14e   :  { %v63_v20 = vpop.xlane.xlu0 %62 }
 0x14f   :  { %97 = vlog2.f32 %v63_v20 }
 0x159   :  { %v98_v21 = vpop.eup %97 }
 0x15a   :  { %v65_v22 = vmul.f32 0.6931472, %v98_v21 }
 0x15c   :  { %v70_v23 = vrot.slane %v65_v22, %v25_v2 }
 0x15e   :  { %v72_v24 = vsub.f32 %v45_v12, %v70_v23 }
 0x160   :  { %77 = vst.msk [vmem:[#allocation5] sm:$0x3] %vm75_vm1, %v72_v24 }
 0x161   :  { %132 = shalt.err (!%p129_p12)
}
 0x162   :  { %s133_s22 = scalar_lea.hbm %s188_s1, 32 }
 0x163   :  { %p134_p13 = scmp.ne.s32.totalorder %s188_s1, %s133_s22  ;;  %p137_p0 = scmp.lt.u32.totalorder %s133_s22, %s188_s1 }
 0x165   :  { %p139_p1 = pnand %p137_p0, %p134_p13 }
 0x167   :  { %142 = shalt.err (!%p139_p1)
}
 0x168   :  { %87 = dma.vmem_to_hbm [thread:$0]  %s85_s18, 32, %s188_s1, [#allocation4]  }
 0x169   :  { %145 = dma.done.wait [#allocation4], 32  }
 0x16a   :  { %146 = vsyncadd [#allocation4], 4294967264 }
 0x16b   :  { %91 = vsyncpa [#allocation3], 1 }
 0x16c   :  { %92 = vsyncpa [#allocation4], 1 }

</bundles_post_ra>
